<compile_context>
chip_gen: v7x
topology: tpu7x:2x2x1
jax: 0.10.0
libtpu: 0.0.40
codegen_flags: <defaults>
</compile_context>

<pallas_src>
import math

import jax
import jax.numpy as jnp
from jax.experimental import pallas as pl
from jax.experimental.pallas import tpu as pltpu

LANE = 128          # TPU lane width (last-dim tiling unit)
SUBLANE_BF16 = 16   # bf16 packs 16 sublanes per vreg -> align batch rows to 16
K_TILE = 2048       # max input-feature (K) tile streamed per grid step


def _round_up(x, m):
    return ((x + m - 1) // m) * m


# -----------------------------------------------------------------------------
# Pallas kernel: fused 3-layer MLP forward for one (batch tile, K tile) step.
#   Layer-1 accumulates over the K grid axis into a VMEM f32 scratch; the rest
#   of the network runs at the last K step.  bf16 operands -> MXU (f32 acc),
#   bias + ReLU in f32 on the VPU.
# -----------------------------------------------------------------------------
def mlp_forward_kernel(x_ref, w1_ref, b1_ref, w2_ref, b2_ref, w3_ref, b3_ref,
                       o_ref, acc_ref):
    k = pl.program_id(1)

    @pl.when(k == 0)
    def _():
        acc_ref[...] = jnp.zeros_like(acc_ref)

    # In-kernel f32 -> bf16 cast of the activation tile (rides the VPU while
    # the MXU is busy; avoids a separate wrapper-side cast pass over x).
    x = x_ref[...].astype(jnp.bfloat16)                                # [TB, TK]
    acc_ref[...] += jnp.dot(x, w1_ref[...],
                            preferred_element_type=jnp.float32)        # [TB, H]

    @pl.when(k == pl.num_programs(1) - 1)
    def _():
        h1 = jnp.maximum(acc_ref[...] + b1_ref[...], 0.0)              # f32 ReLU
        h2 = jnp.dot(h1.astype(jnp.bfloat16), w2_ref[...],
                     preferred_element_type=jnp.float32)
        h2 = jnp.maximum(h2 + b2_ref[...], 0.0)                        # f32 ReLU
        out = jnp.dot(h2.astype(jnp.bfloat16), w3_ref[...],
                      preferred_element_type=jnp.float32)
        o_ref[...] = (out + b3_ref[...]).astype(o_ref.dtype)           # lane-dense store


def mlp_forward(x_flat, params, num_classes):
    """x_flat: [B, D_IN] float32.  params: bf16 [in,out] weights, f32 [1,out]
    biases, with the final layer already zero-padded to LANE output columns."""
    B, D_IN = x_flat.shape
    w1, b1 = params["w1"], params["b1"]
    w2, b2 = params["w2"], params["b2"]
    w3, b3 = params["w3"], params["b3"]
    HIDDEN = w1.shape[1]
    N_PAD = w3.shape[1]                                   # multiple of 128

    # --- batch tiling: pad B to a 16-row (bf16 sublane) multiple, fat tiles --
    b_pad = _round_up(max(B, SUBLANE_BF16), SUBLANE_BF16)
    if b_pad >= 1024:
        tile_b = 512
    elif b_pad >= 512:
        tile_b = 256        # >= 2 "parallel" grid steps -> both v7x TCs busy
    else:
        tile_b = b_pad      # single fat tile (16-row aligned)
    if b_pad != B:
        # TODO(synk): for very large ragged batches, fold this pad into the
        # producer (or rely on the ragged-last-tile handling) to avoid an
        # extra activation pass; negligible at these sizes.
        x_flat = jnp.pad(x_flat, ((0, b_pad - B), (0, 0)))
    grid_b = pl.cdiv(b_pad, tile_b)

    # --- K tiling: stream w1 over the input-feature dim (scales to big D_IN) -
    if D_IN <= K_TILE:
        tk, d_pad = D_IN, D_IN
    else:
        tk = K_TILE
        d_pad = _round_up(D_IN, tk)
    grid_k = d_pad // tk
    if d_pad != D_IN:
        # TODO(synk): pre-pad w1 once at setup instead of per-forward.
        x_flat = jnp.pad(x_flat, ((0, 0), (0, d_pad - D_IN)))
        w1 = jnp.pad(w1, ((0, d_pad - D_IN), (0, 0)))

    # --- BlockSpecs --------------------------------------------------------
    def resident(shape):
        # Full-array block whose index never changes: request a single buffer
        # (no useless double-buffer).  Fall back if pipeline_mode unavailable.
        idx = lambda i, k: (0,) * len(shape)
        try:
            return pl.BlockSpec(shape, idx, pipeline_mode=pl.Buffered(1))
        except TypeError:
            return pl.BlockSpec(shape, idx)

    in_specs = [
        pl.BlockSpec((tile_b, tk), lambda i, k: (i, k)),      # x tile (f32)
        pl.BlockSpec((tk, HIDDEN), lambda i, k: (k, 0)),      # w1 K-streamed
        resident(b1.shape),
        resident(w2.shape), resident(b2.shape),
        resident(w3.shape), resident(b3.shape),
    ]
    out_spec = pl.BlockSpec((tile_b, N_PAD), lambda i, k: (i, 0))

    # --- VMEM budget: matches the real buffering scheme + headroom ----------
    def nbytes(shape, dtype):
        return math.prod(shape) * jnp.dtype(dtype).itemsize

    stream_bytes = (nbytes((tile_b, tk), jnp.float32)         # x tile
                    + nbytes((tk, HIDDEN), jnp.bfloat16)      # w1 tile
                    + nbytes((tile_b, N_PAD), jnp.float32))   # out tile
    resident_bytes = (nbytes(b1.shape, b1.dtype) + nbytes(w2.shape, w2.dtype)
                      + nbytes(b2.shape, b2.dtype) + nbytes(w3.shape, w3.dtype)
                      + nbytes(b3.shape, b3.dtype))
    acc_bytes = nbytes((tile_b, HIDDEN), jnp.float32)
    # 2x for double-buffered streamed blocks; budget residents at 2x too in
    # case single-buffering was unavailable; +4 MiB Mosaic scratch headroom.
    vmem_limit = int(2 * stream_bytes + 2 * resident_bytes + acc_bytes
                     + (4 << 20))

    # --- cost hint so XLA can overlap the custom call with surrounding ops --
    flops = 2 * b_pad * (d_pad * HIDDEN + HIDDEN * HIDDEN + HIDDEN * N_PAD)
    bytes_accessed = (
        nbytes((b_pad, d_pad), jnp.float32)
        + nbytes(w1.shape, w1.dtype) + resident_bytes
        + nbytes((b_pad, N_PAD), jnp.float32)
    )

    # TODO(synk): on v5e (820 GB/s HBM, 1 vst slot) a bf16 output further
    # halves the dominant write-back; kept f32 here to match PyTorch logits.
    out_padded = pl.pallas_call(
        mlp_forward_kernel,
        out_shape=jax.ShapeDtypeStruct((b_pad, N_PAD), jnp.float32),
        grid=(grid_b, grid_k),
        in_specs=in_specs,
        out_specs=out_spec,
        scratch_shapes=[pltpu.VMEM((tile_b, HIDDEN), jnp.float32)],
        compiler_params=pltpu.CompilerParams(
            dimension_semantics=("parallel", "arbitrary"),
            vmem_limit_bytes=vmem_limit,
        ),
        cost_estimate=pl.CostEstimate(
            flops=flops, transcendentals=0, bytes_accessed=bytes_accessed),
    )(x_flat, w1, b1, w2, b2, w3, b3)

    return out_padded[:B, :num_classes]


# -----------------------------------------------------------------------------
# Parameter setup + cob (teleportation) glue in plain JAX (applied ONCE).
# -----------------------------------------------------------------------------
def init_params(key, d_in, hidden, num_classes):
    """Deterministic init mimicking PyTorch Linear default (uniform +- 1/sqrt(fan_in))."""
    ks = jax.random.split(key, 6)

    def lin(kw, kb, fan_in, fan_out):
        bound = 1.0 / jnp.sqrt(jnp.float32(fan_in))
        # stored as [in, out] (transposed vs. PyTorch's [out, in])
        w = jax.random.uniform(kw, (fan_in, fan_out), jnp.float32, -bound, bound)
        b = jax.random.uniform(kb, (1, fan_out), jnp.float32, -bound, bound)
        return w, b

    w1, b1 = lin(ks[0], ks[1], d_in, hidden)
    w2, b2 = lin(ks[2], ks[3], hidden, hidden)
    w3, b3 = lin(ks[4], ks[5], hidden, num_classes)
    return {"w1": w1, "b1": b1, "w2": w2, "b2": b2, "w3": w3, "b3": b3}


def teleport_weights(params, cob1, cob2, cob_in, cob_out):
    """Apply change of basis to Linear weights (on [in,out] layout):
       W' = W * (1/prev_cob)[:,None] * next_cob[None,:],  b' = next_cob * b.
       With initialize_cob() the cob is all ones -> identity (matches __init__).
       Applied once at setup and cached (not re-done per forward)."""
    def tele(w, b, prev, nxt):
        return w * (1.0 / prev)[:, None] * nxt[None, :], b * nxt[None, :]

    w1, b1 = tele(params["w1"], params["b1"], cob_in, cob1)
    w2, b2 = tele(params["w2"], params["b2"], cob1, cob2)
    w3, b3 = tele(params["w3"], params["b3"], cob2, cob_out)
    return {"w1": w1, "b1": b1, "w2": w2, "b2": b2, "w3": w3, "b3": b3}


def prepare_kernel_params(params_f32):
    """Cast weights to bf16 for the MXU, keep biases f32, and zero-pad the
    final layer's output dimension to a multiple of 128 lanes (lane-dense
    output store; padded logits are exactly zero and sliced off)."""
    num_classes = params_f32["w3"].shape[1]
    n_pad = _round_up(num_classes, LANE)
    w3 = jnp.pad(params_f32["w3"], ((0, 0), (0, n_pad - num_classes)))
    b3 = jnp.pad(params_f32["b3"], ((0, 0), (0, n_pad - num_classes)))
    return {
        "w1": params_f32["w1"].astype(jnp.bfloat16),
        "b1": params_f32["b1"],
        "w2": params_f32["w2"].astype(jnp.bfloat16),
        "b2": params_f32["b2"],
        "w3": w3.astype(jnp.bfloat16),
        "b3": b3,
    }, num_classes


def neural_teleportation_model_forward(x_nchw, kernel_params, num_classes):
    """NeuralTeleportationModel.forward: flatten (C,H,W) then run wrapped MLP."""
    B = x_nchw.shape[0]
    x_flat = x_nchw.reshape(B, -1)            # nn.Flatten, NCHW -> [B, C*H*W]
    return mlp_forward(x_flat, kernel_params, num_classes)


if __name__ == "__main__":
    # Small shapes consistent with the module's image-classification usage.
    B, C, H, W = 2, 4, 16, 16          # input_shape = (2, 4, 16, 16), NCHW
    HIDDEN, NUM_CLASSES = 128, 10
    D_IN = C * H * W                   # 1024 (multiple of 128 lanes)

    key = jax.random.PRNGKey(0)
    kx, kp = jax.random.split(key)
    x = jax.random.normal(kx, (B, C, H, W), jnp.float32)

    params = init_params(kp, D_IN, HIDDEN, NUM_CLASSES)

    # initialize_cob(): cob = ones everywhere -> identity teleportation,
    # applied once and cached (no per-forward re-scaling of weights).
    cob_in = jnp.ones((D_IN,), jnp.float32)          # get_input_cob()
    cob1 = jnp.ones((HIDDEN,), jnp.float32)
    cob2 = jnp.ones((HIDDEN,), jnp.float32)
    cob_out = jnp.ones((NUM_CLASSES,), jnp.float32)  # get_output_cob()
    params = teleport_weights(params, cob1, cob2, cob_in, cob_out)

    kernel_params, num_classes = prepare_kernel_params(params)

    out = neural_teleportation_model_forward(x, kernel_params, num_classes)
    out = jax.block_until_ready(out)

    # Pure-JAX reference with the same bf16-into-MXU / f32-accumulate recipe.
    xf = x.reshape(B, -1).astype(jnp.bfloat16)
    r = jnp.dot(xf, kernel_params["w1"], preferred_element_type=jnp.float32)
    r = jnp.maximum(r + kernel_params["b1"], 0.0)
    r = jnp.dot(r.astype(jnp.bfloat16), kernel_params["w2"],
                preferred_element_type=jnp.float32)
    r = jnp.maximum(r + kernel_params["b2"], 0.0)
    r = jnp.dot(r.astype(jnp.bfloat16), kernel_params["w3"],
                preferred_element_type=jnp.float32)
    ref = (r + kernel_params["b3"])[:, :NUM_CLASSES]

    assert out.shape == (B, NUM_CLASSES)
    assert jnp.allclose(out, ref, atol=2e-3, rtol=2e-3), "mismatch vs reference"

    # TODO(synk): graph construction (NetworkGrapher), random_teleport,
    # calculate_cob, and hessian utilities are host-side bookkeeping /
    # autodiff with no single forward-pass compute and are not translated
    # to Pallas.
    print("KERNEL_OK")
</pallas_src>

<mosaic_0001>
module attributes {stable_mosaic.version = 11 : i64} {
  func.func @mlp_forward_kernel(%arg0: i32, %arg1: i32, %arg2: memref<16x1024xf32, #tpu.memory_space<vmem>>, %arg3: memref<1024x128xbf16, #tpu.memory_space<vmem>>, %arg4: memref<1x128xf32, #tpu.memory_space<vmem>>, %arg5: memref<128x128xbf16, #tpu.memory_space<vmem>>, %arg6: memref<1x128xf32, #tpu.memory_space<vmem>>, %arg7: memref<128x128xbf16, #tpu.memory_space<vmem>>, %arg8: memref<1x128xf32, #tpu.memory_space<vmem>>, %arg9: memref<16x128xf32, #tpu.memory_space<vmem>>, %arg10: memref<16x128xf32, #tpu.memory_space<vmem>>) attributes {dimension_semantics = [#tpu.dimension_semantics<parallel>, #tpu.dimension_semantics<arbitrary>], iteration_bounds = array<i64: 1, 1>, scalar_prefetch = 0 : i64, scratch_operands = 1 : i64, tpu.core_type = #tpu.core_type<tc>, window_params = [{transform_indices = @transform_0, window_bounds = array<i64: 16, 1024>}, {transform_indices = @transform_1, window_bounds = array<i64: 1024, 128>}, {pipeline_mode = #tpu.pipeline_mode<synchronous>, transform_indices = @transform_2, window_bounds = array<i64: 1, 128>}, {pipeline_mode = #tpu.pipeline_mode<synchronous>, transform_indices = @transform_3, window_bounds = array<i64: 128, 128>}, {pipeline_mode = #tpu.pipeline_mode<synchronous>, transform_indices = @transform_4, window_bounds = array<i64: 1, 128>}, {pipeline_mode = #tpu.pipeline_mode<synchronous>, transform_indices = @transform_5, window_bounds = array<i64: 128, 128>}, {pipeline_mode = #tpu.pipeline_mode<synchronous>, transform_indices = @transform_6, window_bounds = array<i64: 1, 128>}, {transform_indices = @transform_7, window_bounds = array<i64: 16, 128>}]} {
    %c0_i32 = arith.constant 0 : i32
    %0 = arith.cmpi eq, %arg1, %c0_i32 : i32
    %1 = arith.extui %0 : i1 to i32
    %c0_i32_0 = arith.constant 0 : i32
    %2 = arith.cmpi ne, %1, %c0_i32_0 : i32
    scf.if %2 {
      %cst_10 = arith.constant 0.000000e+00 : f32
      %13 = vector.broadcast %cst_10 : f32 to vector<16x128xf32>
      %c0_11 = arith.constant 0 : index
      %c0_12 = arith.constant 0 : index
      %14 = vector.load %arg10[%c0_11, %c0_12] : memref<16x128xf32, #tpu.memory_space<vmem>>, vector<16x128xf32>
      tpu.vector_store %arg10[%c0_11, %c0_12], %13 {strides = array<i32>} : memref<16x128xf32, #tpu.memory_space<vmem>>, vector<16x128xf32>,
    } else {
    }
    %c0 = arith.constant 0 : index
    %c0_1 = arith.constant 0 : index
    %3 = vector.load %arg2[%c0, %c0_1] : memref<16x1024xf32, #tpu.memory_space<vmem>>, vector<16x1024xf32>
    %4 = arith.truncf %3 : vector<16x1024xf32> to vector<16x1024xbf16>
    %c0_2 = arith.constant 0 : index
    %c0_3 = arith.constant 0 : index
    %5 = vector.load %arg10[%c0_2, %c0_3] : memref<16x128xf32, #tpu.memory_space<vmem>>, vector<16x128xf32>
    %c0_4 = arith.constant 0 : index
    %c0_5 = arith.constant 0 : index
    %6 = vector.load %arg3[%c0_4, %c0_5] : memref<1024x128xbf16, #tpu.memory_space<vmem>>, vector<1024x128xbf16>
    %cst = arith.constant dense<0.000000e+00> : vector<16x128xf32>
    %7 = tpu.matmul %4, %6, %cst {dimension_numbers = #tpu.dot_dimension_numbers<[1], [0], [0], [1], [0, 0, 1, 1], [], []>} : vector<16x1024xbf16>, vector<1024x128xbf16>, vector<16x128xf32> -> vector<16x128xf32>
    %8 = arith.addf %5, %7 : vector<16x128xf32>
    %c0_6 = arith.constant 0 : index
    %c0_7 = arith.constant 0 : index
    %9 = vector.load %arg10[%c0_6, %c0_7] : memref<16x128xf32, #tpu.memory_space<vmem>>, vector<16x128xf32>
    tpu.vector_store %arg10[%c0_6, %c0_7], %8 {strides = array<i32>} : memref<16x128xf32, #tpu.memory_space<vmem>>, vector<16x128xf32>,
    %c0_i32_8 = arith.constant 0 : i32
    %10 = arith.cmpi eq, %arg1, %c0_i32_8 : i32
    %11 = arith.extui %10 : i1 to i32
    %c0_i32_9 = arith.constant 0 : i32
    %12 = arith.cmpi ne, %11, %c0_i32_9 : i32
    scf.if %12 {
      %c0_10 = arith.constant 0 : index
      %c0_11 = arith.constant 0 : index
      %13 = vector.load %arg10[%c0_10, %c0_11] : memref<16x128xf32, #tpu.memory_space<vmem>>, vector<16x128xf32>
      %c0_12 = arith.constant 0 : index
      %c0_13 = arith.constant 0 : index
      %14 = vector.load %arg4[%c0_12, %c0_13] : memref<1x128xf32, #tpu.memory_space<vmem>>, vector<1x128xf32>
      %15 = vector.broadcast %14 : vector<1x128xf32> to vector<16x128xf32>
      %16 = arith.addf %13, %15 : vector<16x128xf32>
      %cst_14 = arith.constant 0.000000e+00 : f32
      %17 = vector.broadcast %cst_14 : f32 to vector<16x128xf32>
      %18 = arith.maximumf %16, %17 : vector<16x128xf32>
      %19 = arith.truncf %18 : vector<16x128xf32> to vector<16x128xbf16>
      %c0_15 = arith.constant 0 : index
      %c0_16 = arith.constant 0 : index
      %20 = vector.load %arg5[%c0_15, %c0_16] : memref<128x128xbf16, #tpu.memory_space<vmem>>, vector<128x128xbf16>
      %cst_17 = arith.constant dense<0.000000e+00> : vector<16x128xf32>
      %21 = tpu.matmul %19, %20, %cst_17 {dimension_numbers = #tpu.dot_dimension_numbers<[1], [0], [0], [1], [0, 0, 1, 1], [], []>} : vector<16x128xbf16>, vector<128x128xbf16>, vector<16x128xf32> -> vector<16x128xf32>
      %c0_18 = arith.constant 0 : index
      %c0_19 = arith.constant 0 : index
      %22 = vector.load %arg6[%c0_18, %c0_19] : memref<1x128xf32, #tpu.memory_space<vmem>>, vector<1x128xf32>
      %23 = vector.broadcast %22 : vector<1x128xf32> to vector<16x128xf32>
      %24 = arith.addf %21, %23 : vector<16x128xf32>
      %cst_20 = arith.constant 0.000000e+00 : f32
      %25 = vector.broadcast %cst_20 : f32 to vector<16x128xf32>
      %26 = arith.maximumf %24, %25 : vector<16x128xf32>
      %27 = arith.truncf %26 : vector<16x128xf32> to vector<16x128xbf16>
      %c0_21 = arith.constant 0 : index
      %c0_22 = arith.constant 0 : index
      %28 = vector.load %arg7[%c0_21, %c0_22] : memref<128x128xbf16, #tpu.memory_space<vmem>>, vector<128x128xbf16>
      %cst_23 = arith.constant dense<0.000000e+00> : vector<16x128xf32>
      %29 = tpu.matmul %27, %28, %cst_23 {dimension_numbers = #tpu.dot_dimension_numbers<[1], [0], [0], [1], [0, 0, 1, 1], [], []>} : vector<16x128xbf16>, vector<128x128xbf16>, vector<16x128xf32> -> vector<16x128xf32>
      %c0_24 = arith.constant 0 : index
      %c0_25 = arith.constant 0 : index
      %30 = vector.load %arg8[%c0_24, %c0_25] : memref<1x128xf32, #tpu.memory_space<vmem>>, vector<1x128xf32>
      %31 = vector.broadcast %30 : vector<1x128xf32> to vector<16x128xf32>
      %32 = arith.addf %29, %31 : vector<16x128xf32>
      %c0_26 = arith.constant 0 : index
      %c0_27 = arith.constant 0 : index
      %33 = vector.load %arg9[%c0_26, %c0_27] : memref<16x128xf32, #tpu.memory_space<vmem>>, vector<16x128xf32>
      tpu.vector_store %arg9[%c0_26, %c0_27], %32 {strides = array<i32>} : memref<16x128xf32, #tpu.memory_space<vmem>>, vector<16x128xf32>,
    } else {
    }
    return
  }
  func.func @transform_0(%arg0: i32, %arg1: i32) -> (i32, i32) {
    %c0_i32 = arith.constant 0 : i32
    return %arg0, %arg1 : i32, i32
  }
  func.func @transform_1(%arg0: i32, %arg1: i32) -> (i32, i32) {
    %c0_i32 = arith.constant 0 : i32
    %c0_i32_0 = arith.constant 0 : i32
    return %arg1, %c0_i32 : i32, i32
  }
  func.func @transform_2(%arg0: i32, %arg1: i32) -> (i32, i32) {
    %c0_i32 = arith.constant 0 : i32
    %c0_i32_0 = arith.constant 0 : i32
    %c0_i32_1 = arith.constant 0 : i32
    return %c0_i32, %c0_i32_0 : i32, i32
  }
  func.func @transform_3(%arg0: i32, %arg1: i32) -> (i32, i32) {
    %c0_i32 = arith.constant 0 : i32
    %c0_i32_0 = arith.constant 0 : i32
    %c0_i32_1 = arith.constant 0 : i32
    return %c0_i32, %c0_i32_0 : i32, i32
  }
  func.func @transform_4(%arg0: i32, %arg1: i32) -> (i32, i32) {
    %c0_i32 = arith.constant 0 : i32
    %c0_i32_0 = arith.constant 0 : i32
    %c0_i32_1 = arith.constant 0 : i32
    return %c0_i32, %c0_i32_0 : i32, i32
  }
  func.func @transform_5(%arg0: i32, %arg1: i32) -> (i32, i32) {
    %c0_i32 = arith.constant 0 : i32
    %c0_i32_0 = arith.constant 0 : i32
    %c0_i32_1 = arith.constant 0 : i32
    return %c0_i32, %c0_i32_0 : i32, i32
  }
  func.func @transform_6(%arg0: i32, %arg1: i32) -> (i32, i32) {
    %c0_i32 = arith.constant 0 : i32
    %c0_i32_0 = arith.constant 0 : i32
    %c0_i32_1 = arith.constant 0 : i32
    return %c0_i32, %c0_i32_0 : i32, i32
  }
  func.func @transform_7(%arg0: i32, %arg1: i32) -> (i32, i32) {
    %c0_i32 = arith.constant 0 : i32
    %c0_i32_0 = arith.constant 0 : i32
    return %arg0, %c0_i32 : i32, i32
  }
}

</mosaic_0001>

<bundles_post_ra>
// kernel: tpu_custom_call.1
= control target key start
LH: loop header
LB: loop body
LE: loop exit
PB: predicated region body
PF: predicated region fallthrough
CT: control target
= control target key end

     0   :  { %12 = vsyncpa [#allocation4], 0  ;;  %s1648_s0 = inlined_call_operand.hbm [shape: f32[16,1024], index: 0, kind: input, shape index: {}]   ;;  %s1649_s1 = inlined_call_operand.hbm [shape: bf16[1024,128], index: 1, kind: input, shape index: {}]   ;;  %s1650_s2 = inlined_call_operand.vmem [shape: f32[1,128], index: 2, kind: input, shape index: {}]   ;;  %s1651_s3 = inlined_call_operand.hbm [shape: bf16[128,128], index: 3, kind: input, shape index: {}]   ;;  %s1652_s4 = inlined_call_operand.vmem [shape: f32[1,128], index: 4, kind: input, shape index: {}]   ;;  %s1653_s5 = inlined_call_operand.hbm [shape: bf16[128,128], index: 5, kind: input, shape index: {}]   ;;  %s1654_s6 = inlined_call_operand.vmem [shape: f32[1,128], index: 6, kind: input, shape index: {}]   ;;  %s1655_s7 = inlined_call_operand.hbm [shape: f32[16,128], index: 7, kind: output, shape index: {}]  }
   0x1   :  { %13 = vsyncpa [#allocation7], 0 }
   0x2   :  { %14 = vsyncpa [#allocation10], 0 }
   0x3   :  { %15 = vsyncpa [#allocation5], 0  ;;  %s1499_s24 = smov [#allocation6]   ;;  %s1381_s28 = scalar_lea.hbm %s1649_s1, 8192 }
   0x4   :  { %s33_s25 = sshll.u32 %s1499_s24, 4  ;;  %p1382_p0 = scmp.ne.s32.totalorder %s1649_s1, %s1381_s28  ;;  %s34_s25 = int_to_ptr.vmem [resolvable:$true] %s33_s25 }
   0x5   :  { %p1385_p1 = scmp.lt.u32.totalorder %s1381_s28, %s1649_s1 }
   0x7   :  { %p1387_p2 = pnand %p1385_p1, %p1382_p0 }
   0x9   :  { %1390 = shalt.err (!%p1387_p2)
}
   0xa   :  { %s1391_s10 = scalar_lea.vmem %s34_s25, 8192  ;;  %p1396_p4 = scmp.lt.s32.totalorder %s34_s25, %s34_s25 }
   0xb   :  { %p1392_p3 = scmp.ne.s32.totalorder %s34_s25, %s1391_s10  ;;  %p1397_p5 = scmp.lt.s32.totalorder %s1391_s10, %s1391_s10 }
   0xd   :  { %p1398_p6 = por %p1397_p5, %p1396_p4 }
   0xf   :  { %p1399_p7 = pnand %p1398_p6, %p1392_p3 }
  0x11   :  { %1402 = shalt.err (!%p1399_p7)
}
  0x12   :  { %s1500_s11 = smov 64   ;;  %s1501_s12 = smov 4  }
  0x13   :  { %39 = dma.hbm_to_vmem [thread:$0]  %s1649_s1, 8192, %s34_s25, [#allocation7], %s1500_s11, %s1500_s11, %s1501_s12  }
  0x14   :  { %s1502_s15 = smov [#allocation3]   ;;  %s1403_s19 = scalar_lea.hbm %s1648_s0, 2048 }
  0x15   :  { %s21_s16 = sshll.u32 %s1502_s15, 4  ;;  %p1404_p8 = scmp.ne.s32.totalorder %s1648_s0, %s1403_s19  ;;  %s22_s16 = int_to_ptr.vmem [resolvable:$true] %s21_s16 }
  0x16   :  { %p1407_p9 = scmp.lt.u32.totalorder %s1403_s19, %s1648_s0 }
  0x18   :  { %p1409_p10 = pnand %p1407_p9, %p1404_p8 }
  0x1a   :  { %1412 = shalt.err (!%p1409_p10)
}
  0x1b   :  { %s1413_s24 = scalar_lea.vmem %s22_s16, 2048  ;;  %p1418_p12 = scmp.lt.s32.totalorder %s22_s16, %s22_s16 }
  0x1c   :  { %p1414_p11 = scmp.ne.s32.totalorder %s22_s16, %s1413_s24  ;;  %p1419_p13 = scmp.lt.s32.totalorder %s1413_s24, %s1413_s24 }
  0x1e   :  { %p1420_p0 = por %p1419_p13, %p1418_p12 }
  0x20   :  { %p1421_p1 = pnand %p1420_p0, %p1414_p11 }
  0x22   :  { %1424 = shalt.err (!%p1421_p1)
}
  0x23   :  { %s1503_s1 = smov 1024   ;;  %s1504_s27 = smov [#allocation8]  }
  0x24   :  { %27 = dma.hbm_to_vmem [thread:$0]  %s1648_s0, 2048, %s22_s16, [#allocation4], %s1503_s1, %s1503_s1, %s1500_s11  }
  0x25   :  { %s47_s28 = sshll.u32 %s1504_s27, 4  ;;  %s1505_s29 = smov [#allocation9]   ;;  %s48_s28 = int_to_ptr.vmem [resolvable:$true] %s47_s28 }
  0x26   :  { %s61_s30 = sshll.u32 %s1505_s29, 4  ;;  %s1425_s10 = scalar_lea.hbm %s1651_s3, 1024  ;;  %s62_s30 = int_to_ptr.vmem [resolvable:$true] %s61_s30 }
  0x27   :  { %p1426_p2 = scmp.ne.s32.totalorder %s1651_s3, %s1425_s10  ;;  %p1429_p3 = scmp.lt.u32.totalorder %s1425_s10, %s1651_s3 }
  0x29   :  { %p1431_p4 = pnand %p1429_p3, %p1426_p2 }
  0x2b   :  { %1434 = shalt.err (!%p1431_p4)
}
  0x2c   :  { %s1435_s0 = scalar_lea.vmem %s48_s28, 1024  ;;  %p1440_p6 = scmp.lt.s32.totalorder %s48_s28, %s48_s28 }
  0x2d   :  { %p1436_p5 = scmp.ne.s32.totalorder %s48_s28, %s1435_s0  ;;  %p1441_p7 = scmp.lt.s32.totalorder %s1435_s0, %s1435_s0 }
  0x2f   :  { %p1442_p8 = por %p1441_p7, %p1440_p6 }
  0x31   :  { %p1443_p9 = pnand %p1442_p8, %p1436_p5 }
  0x33   :  { %1446 = shalt.err (!%p1443_p9)
}
  0x34   :  { %53 = dma.hbm_to_vmem [thread:$0]  %s1651_s3, 1024, %s48_s28, [#allocation7], %s1500_s11, %s1500_s11, %s1501_s12  }
  0x35   :  { %s1447_s21 = scalar_lea.hbm %s1653_s5, 1024 }
  0x36   :  { %p1448_p10 = scmp.ne.s32.totalorder %s1653_s5, %s1447_s21  ;;  %p1451_p11 = scmp.lt.u32.totalorder %s1447_s21, %s1653_s5 }
  0x38   :  { %p1453_p12 = pnand %p1451_p11, %p1448_p10 }
  0x3a   :  { %1456 = shalt.err (!%p1453_p12)
}
  0x3b   :  { %s1457_s25 = scalar_lea.vmem %s62_s30, 1024  ;;  %p1462_p0 = scmp.lt.s32.totalorder %s62_s30, %s62_s30 }
  0x3c   :  { %p1458_p13 = scmp.ne.s32.totalorder %s62_s30, %s1457_s25  ;;  %p1463_p1 = scmp.lt.s32.totalorder %s1457_s25, %s1457_s25 }
  0x3e   :  { %p1464_p2 = por %p1463_p1, %p1462_p0 }
  0x40   :  { %p1465_p3 = pnand %p1464_p2, %p1458_p13 }
  0x42   :  { %1468 = shalt.err (!%p1465_p3)
}
  0x43   :  { %67 = dma.hbm_to_vmem [thread:$0]  %s1653_s5, 1024, %s62_s30, [#allocation10], %s1500_s11, %s1500_s11, %s1501_s12  }
  0x44   :  { %1491 = dma.done.wait [#allocation4], 2048  }
  0x45   :  { %1492 = vsyncadd [#allocation4], 4294965248 }
  0x46   :  { %1493 = dma.done.wait [#allocation7], 9216  }
  0x47   :  { %1494 = vsyncadd [#allocation7], 4294958080 }
  0x48   :  { %1495 = dma.done.wait [#allocation10], 1024  }
  0x49   :  { %1496 = vsyncadd [#allocation10], 4294966272  ;;  %v1301_v0 = vld [vmem:[#allocation6 + $0x40] sm:$0xff]   ;;  %v1305_v4 = vld [vmem:[#allocation6 + $0x48] sm:$0xff]   ;;  %vm1507_vm0 = vmmov 0   ;;  %s1508_s29 = smov [#allocation11]  }
  0x4a   :  { %v1302_v1 = vld [vmem:[#allocation6 + $0xc0] sm:$0xff]   ;;  %1143 = vmatprep.subr.bf16.mxu0 %v1301_v0  ;;  %v1306_v5 = vld [vmem:[#allocation6 + $0xc8] sm:$0xff]   ;;  %v1309_v8 = vld [vmem:[#allocation6 + $0x50] sm:$0xff]   ;;  %s1046_s30 = sshll.u32 %s1508_s29, 4  ;;  %s1047_s30 = int_to_ptr.vmem [resolvable:$true] %s1046_s30 }
  0x4b   :  { %v1303_v2 = vld [vmem:[#allocation6] sm:$0xff]   ;;  %1165 = vmatprep.subr.bf16.mxu1 %v1302_v1  ;;  %v1307_v6 = vld [vmem:[#allocation6 + $0x8] sm:$0xff]   ;;  %v1310_v9 = vld [vmem:[#allocation6 + $0xd0] sm:$0xff]   ;;  %p1474_p5 = scmp.lt.s32.totalorder %s1047_s30, %s1047_s30 }
  0x4c   :  { %v1304_v3 = vld [vmem:[#allocation6 + $0x80] sm:$0xff]   ;;  %1144 = vmatpush3.bf16.msra.mxu0 %v1303_v2  ;;  %v1308_v7 = vld [vmem:[#allocation6 + $0x88] sm:$0xff]   ;;  %v1311_v10 = vld [vmem:[#allocation6 + $0x10] sm:$0xff]  }
  0x4d   :  { %1166 = vmatpush3.bf16.msra.mxu1 %v1304_v3  ;;  %1145 = vmatprep.subr.bf16.mxu0 %v1305_v4  ;;  %v1312_v11 = vld [vmem:[#allocation6 + $0x90] sm:$0xff]   ;;  %v1313_v12 = vld [vmem:[#allocation6 + $0x58] sm:$0xff]   ;;  %v1317_v16 = vld [vmem:[#allocation6 + $0x60] sm:$0xff]  }
  0x4e   :  { %1167 = vmatprep.subr.bf16.mxu1 %v1306_v5  ;;  %v1314_v13 = vld [vmem:[#allocation6 + $0xd8] sm:$0xff]   ;;  %v1318_v17 = vld [vmem:[#allocation6 + $0xe0] sm:$0xff]   ;;  %v1321_v20 = vld [vmem:[#allocation6 + $0x68] sm:$0xff]  }
  0x4f   :  { %v1315_v14 = vld [vmem:[#allocation6 + $0x18] sm:$0xff]   ;;  %v1319_v18 = vld [vmem:[#allocation6 + $0x20] sm:$0xff]   ;;  %v1322_v21 = vld [vmem:[#allocation6 + $0xe8] sm:$0xff]  }
  0x50   :  { %1146 = vmatpush3.bf16.msra.mxu0 %v1307_v6  ;;  %v1316_v15 = vld [vmem:[#allocation6 + $0x98] sm:$0xff]   ;;  %v1320_v19 = vld [vmem:[#allocation6 + $0xa0] sm:$0xff]   ;;  %v1323_v22 = vld [vmem:[#allocation6 + $0x28] sm:$0xff]  }
  0x51   :  { %1168 = vmatpush3.bf16.msra.mxu1 %v1308_v7  ;;  %1147 = vmatprep.subr.bf16.mxu0 %v1309_v8  ;;  %v1324_v23 = vld [vmem:[#allocation6 + $0xa8] sm:$0xff]   ;;  %v1325_v24 = vld [vmem:[#allocation6 + $0x70] sm:$0xff]   ;;  %v1329_v28 = vld [vmem:[#allocation6 + $0x78] sm:$0xff]  }
  0x52   :  { %1169 = vmatprep.subr.bf16.mxu1 %v1310_v9  ;;  %v1326_v25 = vld [vmem:[#allocation6 + $0xf0] sm:$0xff]   ;;  %v1330_v29 = vld [vmem:[#allocation6 + $0xf8] sm:$0xff]   ;;  %v90_v32 = vld [vmem:[#allocation3 + $0x8] sm:$0xff] }
  0x53   :  { %v1327_v26 = vld [vmem:[#allocation6 + $0x30] sm:$0xff]   ;;  %v1331_v30 = vld [vmem:[#allocation6 + $0x38] sm:$0xff]   ;;  %v98_v33 = vld [vmem:[#allocation3 + $0x48] sm:$0xff] }
  0x54   :  { %1148 = vmatpush3.bf16.msra.mxu0 %v1311_v10  ;;  %v1328_v27 = vld [vmem:[#allocation6 + $0xb0] sm:$0xff]   ;;  %v1332_v31 = vld [vmem:[#allocation6 + $0xb8] sm:$0xff]   ;;  %v106_v35 = vpack.c.bf16 %v98_v33, %v90_v32  ;;  %v89_v37 = vld [vmem:[#allocation3] sm:$0xff] }
  0x55   :  { %1170 = vmatpush3.bf16.msra.mxu1 %v1312_v11  ;;  %1149 = vmatprep.subr.bf16.mxu0 %v1313_v12  ;;  %v92_v34 = vld [vmem:[#allocation3 + $0x18] sm:$0xff]  ;;  %v97_v38 = vld [vmem:[#allocation3 + $0x40] sm:$0xff]  ;;  %v91_v41 = vld [vmem:[#allocation3 + $0x10] sm:$0xff] }
  0x56   :  { %1171 = vmatprep.subr.bf16.mxu1 %v1314_v13  ;;  %v100_v36 = vld [vmem:[#allocation3 + $0x58] sm:$0xff]  ;;  %v105_v40 = vpack.c.bf16 %v97_v38, %v89_v37  ;;  %v99_v42 = vld [vmem:[#allocation3 + $0x50] sm:$0xff]  ;;  %659 = vmatprep.mubr.bf16.mxu0 %v106_v35  ;;  %v1333_v44 = vld [vmem:[#allocation6 + $0x140] sm:$0xff]  }
  0x57   :  { %v108_v39 = vpack.c.bf16 %v100_v36, %v92_v34  ;;  %v107_v43 = vpack.c.bf16 %v99_v42, %v91_v41  ;;  %v1334_v45 = vld [vmem:[#allocation6 + $0x1c0] sm:$0xff]   ;;  %v1337_v48 = vld [vmem:[#allocation6 + $0x148] sm:$0xff]   ;;  %v1341_v52 = vld [vmem:[#allocation6 + $0x150] sm:$0xff]  }
  0x58   :  { %1150 = vmatpush3.bf16.msra.mxu0 %v1315_v14  ;;  %v1335_v46 = vld [vmem:[#allocation6 + $0x100] sm:$0xff]   ;;  %v1338_v49 = vld [vmem:[#allocation6 + $0x1c8] sm:$0xff]   ;;  %v1342_v53 = vld [vmem:[#allocation6 + $0x1d0] sm:$0xff]  }
  0x59   :  { %1172 = vmatpush3.bf16.msra.mxu1 %v1316_v15  ;;  %1151 = vmatprep.subr.bf16.mxu0 %v1317_v16  ;;  %v1336_v47 = vld [vmem:[#allocation6 + $0x180] sm:$0xff]   ;;  %v1339_v50 = vld [vmem:[#allocation6 + $0x108] sm:$0xff]   ;;  %v1343_v54 = vld [vmem:[#allocation6 + $0x110] sm:$0xff]  }
  0x5a   :  { %1173 = vmatprep.subr.bf16.mxu1 %v1318_v17  ;;  %700 = vmatprep.mubr.bf16.mxu1 %v108_v39  ;;  %v1340_v51 = vld [vmem:[#allocation6 + $0x188] sm:$0xff]   ;;  %v1344_v55 = vld [vmem:[#allocation6 + $0x190] sm:$0xff]   ;;  %v1345_v56 = vld [vmem:[#allocation6 + $0x158] sm:$0xff]  }
  0x5b   :  { %v1346_v57 = vld [vmem:[#allocation6 + $0x1d8] sm:$0xff]   ;;  %v1349_v60 = vld [vmem:[#allocation6 + $0x160] sm:$0xff]   ;;  %v1353_v0 = vld [vmem:[#allocation6 + $0x168] sm:$0xff]  }
  0x5c   :  { %1152 = vmatpush3.bf16.msra.mxu0 %v1319_v18  ;;  %v1347_v58 = vld [vmem:[#allocation6 + $0x118] sm:$0xff]   ;;  %v1350_v61 = vld [vmem:[#allocation6 + $0x1e0] sm:$0xff]   ;;  %v1354_v1 = vld [vmem:[#allocation6 + $0x1e8] sm:$0xff]  }
  0x5d   :  { %1174 = vmatpush3.bf16.msra.mxu1 %v1320_v19  ;;  %1153 = vmatprep.subr.bf16.mxu0 %v1321_v20  ;;  %v1348_v59 = vld [vmem:[#allocation6 + $0x198] sm:$0xff]   ;;  %v1351_v62 = vld [vmem:[#allocation6 + $0x120] sm:$0xff]   ;;  %v1355_v2 = vld [vmem:[#allocation6 + $0x128] sm:$0xff]  }
  0x5e   :  { %1175 = vmatprep.subr.bf16.mxu1 %v1322_v21  ;;  %v1352_v63 = vld [vmem:[#allocation6 + $0x1a0] sm:$0xff]   ;;  %v1356_v3 = vld [vmem:[#allocation6 + $0x1a8] sm:$0xff]   ;;  %v1357_v4 = vld [vmem:[#allocation6 + $0x170] sm:$0xff]  }
  0x5f   :  { %v1358_v5 = vld [vmem:[#allocation6 + $0x1f0] sm:$0xff]   ;;  %v1361_v8 = vld [vmem:[#allocation6 + $0x178] sm:$0xff]   ;;  %v94_v12 = vld [vmem:[#allocation3 + $0x28] sm:$0xff] }
  0x60   :  { %1154 = vmatpush3.bf16.msra.mxu0 %v1323_v22  ;;  %v1359_v6 = vld [vmem:[#allocation6 + $0x130] sm:$0xff]   ;;  %v1362_v9 = vld [vmem:[#allocation6 + $0x1f8] sm:$0xff]   ;;  %v102_v13 = vld [vmem:[#allocation3 + $0x68] sm:$0xff] }
  0x61   :  { %1176 = vmatpush3.bf16.msra.mxu1 %v1324_v23  ;;  %1155 = vmatprep.subr.bf16.mxu0 %v1325_v24  ;;  %v1360_v7 = vld [vmem:[#allocation6 + $0x1b0] sm:$0xff]   ;;  %v1363_v10 = vld [vmem:[#allocation6 + $0x138] sm:$0xff]   ;;  %v110_v16 = vpack.c.bf16 %v102_v13, %v94_v12  ;;  %v93_v18 = vld [vmem:[#allocation3 + $0x20] sm:$0xff] }
  0x62   :  { %1177 = vmatprep.subr.bf16.mxu1 %v1326_v25  ;;  %v1364_v11 = vld [vmem:[#allocation6 + $0x1b8] sm:$0xff]   ;;  %v101_v19 = vld [vmem:[#allocation3 + $0x60] sm:$0xff]  ;;  %v95_v20 = vld [vmem:[#allocation3 + $0x30] sm:$0xff]  ;;  %v1506_v25 = vmov 0.0  }
  0x63   :  { %v96_v14 = vld [vmem:[#allocation3 + $0x38] sm:$0xff]  ;;  %v109_v21 = vpack.c.bf16 %v101_v19, %v93_v18  ;;  %v103_v22 = vld [vmem:[#allocation3 + $0x70] sm:$0xff]  ;;  %v1365_v24 = vld [vmem:[#allocation8] sm:$0xff]  }
  0x64   :  { %1156 = vmatpush3.bf16.msra.mxu0 %v1327_v26  ;;  %v104_v15 = vld [vmem:[#allocation3 + $0x78] sm:$0xff]  ;;  %v111_v23 = vpack.c.bf16 %v103_v22, %v95_v20  ;;  %v1366_v26 = vld [vmem:[#allocation8 + $0x8] sm:$0xff]   ;;  %v1373_v33 = vld [vmem:[#allocation9] sm:$0xff]  }
  0x65   :  { %1178 = vmatpush3.bf16.msra.mxu1 %v1328_v27  ;;  %1157 = vmatprep.subr.bf16.mxu0 %v1329_v28  ;;  %v112_v17 = vpack.c.bf16 %v104_v15, %v96_v14  ;;  %v1367_v27 = vld [vmem:[#allocation8 + $0x10] sm:$0xff]   ;;  %v1368_v28 = vld [vmem:[#allocation8 + $0x18] sm:$0xff]   ;;  %v1374_v34 = vld [vmem:[#allocation9 + $0x8] sm:$0xff]  }
  0x66   :  { %1179 = vmatprep.subr.bf16.mxu1 %v1330_v29  ;;  %v1369_v29 = vld [vmem:[#allocation8 + $0x20] sm:$0xff]   ;;  %v1372_v32 = vld [vmem:[#allocation8 + $0x38] sm:$0xff]   ;;  %v1375_v35 = vld [vmem:[#allocation9 + $0x10] sm:$0xff]  }
  0x67   :  { %v1376_v36 = vld [vmem:[#allocation9 + $0x18] sm:$0xff]   ;;  %v1377_v37 = vld [vmem:[#allocation9 + $0x20] sm:$0xff]   ;;  %v1378_v38 = vld [vmem:[#allocation9 + $0x28] sm:$0xff]  }
  0x68   :  { %1158 = vmatpush3.bf16.msra.mxu0 %v1331_v30  ;;  %v1370_v30 = vld [vmem:[#allocation8 + $0x28] sm:$0xff]   ;;  %v1380_v12 = vld [vmem:[#allocation9 + $0x38] sm:$0xff]   ;;  %v1125_v13 = vld [vmem:[%s1652_s4] ss:$0 sm:$0xff]  ;;  %s1469_s4 = scalar_lea.vmem %s1047_s30, 256 }
  0x69   :  { %1180 = vmatpush3.bf16.msra.mxu1 %v1332_v31  ;;  %1187 = vmatprep.subr.bf16.mxu0 %v1333_v44  ;;  %v1371_v31 = vld [vmem:[#allocation8 + $0x30] sm:$0xff]   ;;  %p1470_p4 = scmp.ne.s32.totalorder %s1047_s30, %s1469_s4  ;;  %p1475_p6 = scmp.lt.s32.totalorder %s1469_s4, %s1469_s4 }
  0x6a   :  { %1209 = vmatprep.subr.bf16.mxu1 %v1334_v45 }
  0x6b   :  { %660 = vmatmul.mubr.bf16.vlgmr.msra.gmra.mrb[0].mxu0 %v105_v40  ;;  %p1476_p7 = por %p1475_p6, %p1474_p5 }
  0x6c   :  { %701 = vmatmul.mubr.bf16.vlgmr.msra.gmra.mrb[0].mxu1 %v107_v43  ;;  %1188 = vmatpush3.bf16.msra.mxu0 %v1335_v46 }
  0x6d   :  { %1210 = vmatpush3.bf16.msra.mxu1 %v1336_v47  ;;  %1189 = vmatprep.subr.bf16.mxu0 %v1337_v48  ;;  %p1477_p8 = pnand %p1476_p7, %p1470_p4 }
  0x6e   :  { %1211 = vmatprep.subr.bf16.mxu1 %v1338_v49  ;;  %741 = vmatprep.mubr.bf16.mxu0 %v110_v16 }
  0x6f   :  { %782 = vmatprep.mubr.bf16.mxu1 %v112_v17 }
  0x70   :  { %1190 = vmatpush3.bf16.msra.mxu0 %v1339_v50 }
  0x71   :  { %1212 = vmatpush3.bf16.msra.mxu1 %v1340_v51  ;;  %1191 = vmatprep.subr.bf16.mxu0 %v1341_v52 }
  0x72   :  { %1213 = vmatprep.subr.bf16.mxu1 %v1342_v53 }
  0x74   :  { %1192 = vmatpush3.bf16.msra.mxu0 %v1343_v54 }
  0x75   :  { %1214 = vmatpush3.bf16.msra.mxu1 %v1344_v55  ;;  %1193 = vmatprep.subr.bf16.mxu0 %v1345_v56 }
  0x76   :  { %1215 = vmatprep.subr.bf16.mxu1 %v1346_v57 }
  0x78   :  { %1194 = vmatpush3.bf16.msra.mxu0 %v1347_v58 }
  0x79   :  { %1216 = vmatpush3.bf16.msra.mxu1 %v1348_v59  ;;  %1195 = vmatprep.subr.bf16.mxu0 %v1349_v60 }
  0x7a   :  { %1217 = vmatprep.subr.bf16.mxu1 %v1350_v61 }
  0x7c   :  { %1196 = vmatpush3.bf16.msra.mxu0 %v1351_v62 }
  0x7d   :  { %1218 = vmatpush3.bf16.msra.mxu1 %v1352_v63  ;;  %1197 = vmatprep.subr.bf16.mxu0 %v1353_v0 }
  0x7e   :  { %1219 = vmatprep.subr.bf16.mxu1 %v1354_v1  ;;  %v1124_v1 = vld [vmem:[%s1650_s2] ss:$0 sm:$0xff] }
  0x80   :  { %1198 = vmatpush3.bf16.msra.mxu0 %v1355_v2 }
  0x81   :  { %1220 = vmatpush3.bf16.msra.mxu1 %v1356_v3  ;;  %1199 = vmatprep.subr.bf16.mxu0 %v1357_v4 }
  0x82   :  { %1221 = vmatprep.subr.bf16.mxu1 %v1358_v5 }
  0x84   :  { %1200 = vmatpush3.bf16.msra.mxu0 %v1359_v6 }
  0x85   :  { %1222 = vmatpush3.bf16.msra.mxu1 %v1360_v7  ;;  %1201 = vmatprep.subr.bf16.mxu0 %v1361_v8 }
  0x86   :  { %1223 = vmatprep.subr.bf16.mxu1 %v1362_v9 }
  0x88   :  { %1202 = vmatpush3.bf16.msra.mxu0 %v1363_v10 }
  0x89   :  { %1224 = vmatpush3.bf16.msra.mxu1 %v1364_v11  ;;  %1249 = vmatprep.subr.bf16.mxu0 %v1506_v25  ;;  %v1379_v11 = vld [vmem:[#allocation9 + $0x30] sm:$0xff]  }
  0x8a   :  { %1269 = vmatprep.subr.bf16.mxu1 %v1506_v25 }
  0x8b   :  { %742 = vmatmul.mubr.bf16.vlgmr.msra.gmra.mrb[4].mxu0 %v109_v21 }
  0x8c   :  { %783 = vmatmul.mubr.bf16.vlgmr.msra.gmra.mrb[4].mxu1 %v111_v23  ;;  %1250 = vmatpush3.bf16.msra.mxu0 %v1365_v24  ;;  %v1134_v23 = vld [vmem:[%s1654_s6] ss:$0 sm:$0xff] }
  0x8d   :  { %1251 = vmatprep.subr.bf16.mxu0 %v1506_v25  ;;  %1265 = vmatprep.mubr.msk.bf16.mxu0 %vm1507_vm0, %v1506_v25 }
  0x8e   :  { %1285 = vmatprep.mubr.msk.bf16.mxu1 %vm1507_vm0, %v1506_v25  ;;  %1270 = vmatpush3.bf16.msra.mxu1 %v1373_v33 }
  0x8f   :  { %1271 = vmatprep.subr.bf16.mxu1 %v1506_v25 }
  0x90   :  { %1252 = vmatpush3.bf16.msra.mxu0 %v1366_v26 }
  0x91   :  { %1253 = vmatprep.subr.bf16.mxu0 %v1506_v25 }
  0x92   :  { %1272 = vmatpush3.bf16.msra.mxu1 %v1374_v34 }
  0x93   :  { %1273 = vmatprep.subr.bf16.mxu1 %v1506_v25 }
  0x94   :  { %1254 = vmatpush3.bf16.msra.mxu0 %v1367_v27 }
  0x95   :  { %1255 = vmatprep.subr.bf16.mxu0 %v1506_v25 }
  0x96   :  { %1274 = vmatpush3.bf16.msra.mxu1 %v1375_v35 }
  0x97   :  { %1275 = vmatprep.subr.bf16.mxu1 %v1506_v25 }
  0x98   :  { %1256 = vmatpush3.bf16.msra.mxu0 %v1368_v28 }
  0x99   :  { %1257 = vmatprep.subr.bf16.mxu0 %v1506_v25 }
  0x9a   :  { %1276 = vmatpush3.bf16.msra.mxu1 %v1376_v36 }
  0x9b   :  { %1277 = vmatprep.subr.bf16.mxu1 %v1506_v25 }
  0x9c   :  { %1258 = vmatpush3.bf16.msra.mxu0 %v1369_v29 }
  0x9d   :  { %1259 = vmatprep.subr.bf16.mxu0 %v1506_v25 }
  0x9e   :  { %1278 = vmatpush3.bf16.msra.mxu1 %v1377_v37 }
  0x9f   :  { %1279 = vmatprep.subr.bf16.mxu1 %v1506_v25 }
  0xa0   :  { %1260 = vmatpush3.bf16.msra.mxu0 %v1370_v30 }
  0xa1   :  { %1261 = vmatprep.subr.bf16.mxu0 %v1506_v25 }
  0xa2   :  { %1280 = vmatpush3.bf16.msra.mxu1 %v1378_v38 }
  0xa3   :  { %1281 = vmatprep.subr.bf16.mxu1 %v1506_v25 }
  0xa4   :  { %1262 = vmatpush3.bf16.msra.mxu0 %v1371_v31 }
  0xa5   :  { %1263 = vmatprep.subr.bf16.mxu0 %v1506_v25 }
  0xa6   :  { %1282 = vmatpush3.bf16.msra.mxu1 %v1379_v11 }
  0xa7   :  { %1283 = vmatprep.subr.bf16.mxu1 %v1506_v25 }
  0xa8   :  { %1264 = vmatpush3.bf16.msra.mxu0 %v1372_v32 }
  0xaa   :  { %1284 = vmatpush3.bf16.msra.mxu1 %v1380_v12 }
 0x13e   :  { %v1159_v39 = vpop.f32.mrb[0].mxu0 }
 0x13f   :  { %v1181_v40 = vpop.f32.mrb[0].mxu1  ;;  %v1160_v41 = vpop.f32.mrb[1].mxu0 }
 0x140   :  { %v1161_v42 = vadd.f32 %v1160_v41, %v1159_v39  ;;  %v1182_v43 = vpop.f32.mrb[1].mxu1  ;;  %v1162_v44 = vpop.f32.mrb[2].mxu0 }
 0x141   :  { %v1183_v45 = vadd.f32 %v1182_v43, %v1181_v40  ;;  %v1184_v46 = vpop.f32.mrb[2].mxu1  ;;  %v1163_v47 = vpop.f32.mrb[3].mxu0 }
 0x142   :  { %v1164_v48 = vadd.f32 %v1163_v47, %v1162_v44  ;;  %v1185_v49 = vpop.f32.mrb[3].mxu1 }
 0x143   :  { %v703_v50 = vadd.f32 %v1183_v45, %v1161_v42  ;;  %v1186_v51 = vadd.f32 %v1185_v49, %v1184_v46 }
 0x145   :  { %v706_v52 = vadd.f32 %v1186_v51, %v1164_v48 }
 0x15e   :  { %v1203_v53 = vpop.f32.mrb[4].mxu0 }
 0x15f   :  { %v1225_v54 = vpop.f32.mrb[4].mxu1  ;;  %v1204_v55 = vpop.f32.mrb[5].mxu0 }
 0x160   :  { %v1205_v56 = vadd.f32 %v1204_v55, %v1203_v53  ;;  %v1226_v57 = vpop.f32.mrb[5].mxu1  ;;  %v1206_v58 = vpop.f32.mrb[6].mxu0 }
 0x161   :  { %v1227_v59 = vadd.f32 %v1226_v57, %v1225_v54  ;;  %v1228_v60 = vpop.f32.mrb[6].mxu1  ;;  %v1207_v61 = vpop.f32.mrb[7].mxu0 }
 0x162   :  { %v744_v62 = vadd.f32 %v1205_v56, %v703_v50  ;;  %v1208_v63 = vadd.f32 %v1207_v61, %v1206_v58  ;;  %v1229_v0 = vpop.f32.mrb[7].mxu1 }
 0x163   :  { %v1230_v2 = vadd.f32 %v1229_v0, %v1228_v60 }
 0x164   :  { %v785_v3 = vadd.f32 %v1227_v59, %v744_v62  ;;  %v747_v4 = vadd.f32 %v1208_v63, %v706_v52 }
 0x166   :  { %v807_v5 = vadd.f32 %v1124_v1, %v785_v3  ;;  %v788_v6 = vadd.f32 %v1230_v2, %v747_v4 }
 0x168   :  { %v808_v7 = vadd.f32 %v1124_v1, %v788_v6  ;;  %v809_v8 = vmax.f32 %v807_v5, 0.0 }
 0x16a   :  { %v810_v9 = vmax.f32 %v808_v7, 0.0 }
 0x16c   :  { %v811_v10 = vpack.c.bf16 %v810_v9, %v809_v8 }
 0x16e   :  { %1266 = vmatmul.mubr.bf16.vlgmr.msra.gmra.mrb[8].mxu0 %v811_v10 }
 0x241   :  { %v917_v14 = vpop.f32.mrb[8].mxu0 }
 0x242   :  { %v918_v15 = vadd.f32 %v1125_v13, %v917_v14  ;;  %v1267_v16 = vpop.f32.mrb[9].mxu0 }
 0x243   :  { %v920_v17 = vpop.f32.mrb[10].mxu0 }
 0x244   :  { %v921_v18 = vadd.f32 %v1125_v13, %v920_v17  ;;  %v1268_v19 = vpop.f32.mrb[11].mxu0  ;;  %v924_v20 = vmax.f32 %v918_v15, 0.0 }
 0x246   :  { %v925_v21 = vmax.f32 %v921_v18, 0.0 }
 0x248   :  { %v926_v22 = vpack.c.bf16 %v925_v21, %v924_v20 }
 0x24a   :  { %1286 = vmatmul.mubr.bf16.vlgmr.msra.gmra.mrb[8].mxu1 %v926_v22 }
 0x31d   :  { %v1032_v24 = vpop.f32.mrb[8].mxu1 }
 0x31e   :  { %v1033_v25 = vadd.f32 %v1134_v23, %v1032_v24  ;;  %v1287_v26 = vpop.f32.mrb[9].mxu1 }
 0x31f   :  { %v1035_v27 = vpop.f32.mrb[10].mxu1 }
 0x320   :  { %1039 = vst [vmem:[#allocation11] sm:$0xff] %v1033_v25  ;;  %v1036_v28 = vadd.f32 %v1134_v23, %v1035_v27  ;;  %v1288_v29 = vpop.f32.mrb[11].mxu1 }
 0x322   :  { %1040 = vst [vmem:[#allocation11 + $0x8] sm:$0xff] %v1036_v28 }
 0x323   :  { %1480 = shalt.err (!%p1477_p8)
}
 0x324   :  { %s1481_s9 = scalar_lea.hbm %s1655_s7, 256 }
 0x325   :  { %p1482_p9 = scmp.ne.s32.totalorder %s1655_s7, %s1481_s9  ;;  %p1485_p10 = scmp.lt.u32.totalorder %s1481_s9, %s1655_s7 }
 0x327   :  { %p1487_p11 = pnand %p1485_p10, %p1482_p9 }
 0x329   :  { %1490 = shalt.err (!%p1487_p11)
}
 0x32a   :  { %s1509_s17 = smov 128   ;;  %s1510_s0 = smov 8  }
 0x32b   :  { %1052 = dma.vmem_to_hbm [thread:$0]  %s1047_s30, 256, %s1655_s7, [#allocation5], %s1509_s17, %s1509_s17, %s1510_s0  }
 0x32c   :  { %1497 = dma.done.wait [#allocation5], 256  }
 0x32d   :  { %1498 = vsyncadd [#allocation5], 4294967040 }
 0x32e   :  { %1056 = vsyncpa [#allocation4], 1 }
 0x32f   :  { %1057 = vsyncpa [#allocation7], 1 }
 0x330   :  { %1058 = vsyncpa [#allocation10], 1 }
 0x331   :  { %1059 = vsyncpa [#allocation5], 1 }

</bundles_post_ra>
